<compile_context>
chip_gen: v7x
topology: tpu7x:2x2x1
jax: 0.10.0
libtpu: 0.0.40
codegen_flags: <defaults>
</compile_context>

<pallas_src>
import numpy as np
import jax
import jax.numpy as jnp
from jax.experimental import pallas as pl
from jax.experimental.pallas import tpu as pltpu


_LANE = 128
_SUBLANE = 8
_FASTPATH_MAX_BYTES = 256 << 10   # below this, a fused XLA add beats kernel-launch overhead
_MIN_BLOCK_BYTES = 512 << 10      # ~85%-of-roofline block size; don't shrink below this
_MAX_BLOCK_BYTES = 10 << 20       # keeps 2x(x)+2x(out)+pe under ~48 MiB scoped VMEM


def make_positional_embedding(seq_len: int, emb_dim: int) -> np.ndarray:
    """Vectorized, numerically identical to the PyTorch __init__ PE table (float64)."""
    pos = np.arange(seq_len, dtype=np.float64)[:, None]                  # [S, 1]
    j = np.arange(emb_dim, dtype=np.float64)[None, :]                    # [1, E]
    inv_freq = 1.0 / np.power(10000.0, 2.0 * np.floor(j / 2.0) / emb_dim)
    pe = pos * inv_freq                                                  # [S, E]
    pe[:, 0::2] = np.sin(pe[:, 0::2])
    pe[:, 1::2] = np.cos(pe[:, 1::2])
    return pe


def _default_block_bytes() -> int:
    """Per-chip x/out block-byte target (HBM BW vs fixed ~0.35us/step grid overhead)."""
    try:
        kind = jax.devices()[0].device_kind.lower()
    except Exception:
        return 2 << 20
    if "v5 lite" in kind or "v5e" in kind or "v5lite" in kind:
        return 1 << 20   # 16 MiB default scoped VMEM; overhead already hidden at 1 MiB
    if "v7" in kind:
        return 6 << 20   # 3.2 TB/s HBM: bigger blocks amortize per-step overhead
    if "v6" in kind:
        return 4 << 20   # fits the 32 MiB default scoped VMEM with double-buffering
    return 2 << 20


def _add_pe_kernel(x_ref, pe_ref, o_ref):
    # x_ref / o_ref: (tb, tn); pe_ref: (1, tn) — broadcast over the batch sublanes.
    o_ref[...] = x_ref[...] + pe_ref[...]


def positional_emb_forward(x: jax.Array, pe: jax.Array, *,
                           target_block_bytes: int | None = None,
                           donate_input: bool = False,
                           allow_fastpath: bool = True) -> jax.Array:
    """x: [B, S, E]; pe: [S, E]. Returns x + pe broadcast over batch."""
    B, S, E = x.shape
    assert pe.shape == (S, E), f"pe shape {pe.shape} does not match ({S}, {E})"
    N = S * E
    itemsize = jnp.dtype(x.dtype).itemsize

    # Tiny-input fast path: launch + pipeline prologue would dominate the add.
    if allow_fastpath and B * N * itemsize < _FASTPATH_MAX_BYTES:
        return x + pe[None].astype(x.dtype)

    if target_block_bytes is None:
        target_block_bytes = _default_block_bytes()
    target_block_bytes = int(min(max(target_block_bytes, 64 << 10), _MAX_BLOCK_BYTES))

    # Lane-dense layout: flatten (S, E) into one trailing axis of length N.
    x2 = x.reshape(B, N)
    pe2 = pe.reshape(1, N).astype(x.dtype)

    # dtype-aware sublane tile: fill whole vregs (8 rows f32 / 16 bf16 / 32 int8).
    pack = max(_SUBLANE, 32 // max(1, itemsize))
    tb = B if B <= pack else pack              # ragged last batch block if B % pack != 0
    grid_b = pl.cdiv(B, tb)

    # Lane tile: multiple of 128 sized by the VMEM budget (no divisibility requirement;
    # Pallas handles the ragged last block).
    tn_target = max(_LANE, (target_block_bytes // max(1, tb * itemsize)) // _LANE * _LANE)
    tn = N if N <= tn_target else tn_target

    # Keep >= ~8 grid steps when it is cheap, so both v7x TensorCores get work.
    while pl.cdiv(N, tn) * grid_b < 8:
        half = ((tn // 2) // _LANE) * _LANE
        if half < _LANE or tb * half * itemsize < _MIN_BLOCK_BYTES:
            break
        tn = half

    grid_n = pl.cdiv(N, tn)
    grid = (grid_n, grid_b)                    # batch innermost -> PE tile reused across it

    # When the PE tile changes across the grid, keep the inner batch axis "arbitrary"
    # so the PE re-DMA-skip does not depend on megacore reordering; when grid_n == 1
    # the PE row is effectively grid-resident and both axes can be "parallel".
    dim_sems = ("parallel", "arbitrary") if grid_n > 1 else ("parallel", "parallel")

    # Explicit scoped-VMEM limit only when the chosen blocks exceed the 16 MiB default.
    need = 4 * tb * tn * itemsize + 2 * tn * itemsize + (1 << 20)
    vmem_limit = int(min(need + (8 << 20), 48 << 20)) if need > (14 << 20) else None

    out2 = pl.pallas_call(
        _add_pe_kernel,
        out_shape=jax.ShapeDtypeStruct((B, N), x.dtype),
        grid_spec=pltpu.PrefetchScalarGridSpec(
            num_scalar_prefetch=0,
            grid=grid,
            in_specs=[
                pl.BlockSpec((tb, tn), lambda ni, bi: (bi, ni)),   # x tile
                pl.BlockSpec((1, tn), lambda ni, bi: (0, ni)),     # shared PE tile
            ],
            out_specs=pl.BlockSpec((tb, tn), lambda ni, bi: (bi, ni)),
        ),
        compiler_params=pltpu.CompilerParams(
            dimension_semantics=dim_sems,
            vmem_limit_bytes=vmem_limit,
        ),
        cost_estimate=pl.CostEstimate(
            flops=B * N,
            transcendentals=0,
            bytes_accessed=(2 * B * N + N) * itemsize,
        ),
        # Donation is opt-in: only safe/profitable when the caller actually donates x
        # (otherwise XLA inserts a protective copy that doubles HBM traffic).
        input_output_aliases={0: 0} if donate_input else {},
    )(x2, pe2)

    return out2.reshape(B, S, E)


class PositionalEmbPallas:
    """JAX/Pallas analogue of the PyTorch Positional_Emb module (dropout p=0)."""

    def __init__(self, seq_len: int, emb_dim: int, dropout: float = 0.0):
        assert dropout == 0.0, "only the default p=0 (identity dropout) is implemented"
        self.seq_len = seq_len
        self.emb_dim = emb_dim
        self.pe_f64 = make_positional_embedding(seq_len, emb_dim)

    def __call__(self, x: jax.Array) -> jax.Array:
        B, S, E = x.shape
        assert E == self.emb_dim, f"emb_dim mismatch: {E} vs {self.emb_dim}"
        assert S <= self.seq_len, f"seq_len {S} exceeds PE table length {self.seq_len}"
        # pos_emb.type_as(x): cast the float64 PE table to x's dtype; slice to S rows.
        pe = jnp.asarray(self.pe_f64[:S], dtype=x.dtype)
        return positional_emb_forward(x, pe)


if __name__ == "__main__":
    # Small shapes consistent with the module: batch=2, seq=8, hidden=32.
    B, S, E = 2, 8, 32
    key = jax.random.PRNGKey(0)
    x = jax.random.normal(key, (B, S, E), dtype=jnp.float32)

    module = PositionalEmbPallas(seq_len=S, emb_dim=E, dropout=0.0)
    pe = jnp.asarray(module.pe_f64[:S], dtype=x.dtype)
    ref = x + pe[None, :, :]

    # 1) Force the Pallas kernel path on the demo shape.
    out = jax.block_until_ready(positional_emb_forward(x, pe, allow_fastpath=False))
    np.testing.assert_allclose(np.asarray(out), np.asarray(ref), rtol=1e-6, atol=1e-6)

    # 2) Module path (takes the tiny-input fast path by design).
    out_fp = jax.block_until_ready(module(x))
    np.testing.assert_allclose(np.asarray(out_fp), np.asarray(ref), rtol=1e-6, atol=1e-6)

    # 3) Exercise multi-block tiling with ragged edges on BOTH axes:
    #    B=10 (> pack=8, not a multiple) and N=33*96=3168 (not a multiple of tn).
    B2, S2, E2 = 10, 33, 96
    x_big = jax.random.normal(jax.random.PRNGKey(1), (B2, S2, E2), dtype=jnp.float32)
    pe_big = jnp.asarray(make_positional_embedding(S2, E2), dtype=x_big.dtype)
    ref_big = x_big + pe_big[None]
    out_big = jax.block_until_ready(
        positional_emb_forward(x_big, pe_big, target_block_bytes=64 << 10,
                               allow_fastpath=False))
    np.testing.assert_allclose(np.asarray(out_big), np.asarray(ref_big),
                               rtol=1e-6, atol=1e-6)

    print("KERNEL_OK")
</pallas_src>

<mosaic_0001>
module attributes {stable_mosaic.version = 11 : i64} {
  func.func @_add_pe_kernel(%arg0: i32, %arg1: i32, %arg2: memref<2x256xf32, #tpu.memory_space<vmem>>, %arg3: memref<1x256xf32, #tpu.memory_space<vmem>>, %arg4: memref<2x256xf32, #tpu.memory_space<vmem>>) attributes {dimension_semantics = [#tpu.dimension_semantics<parallel>, #tpu.dimension_semantics<parallel>], iteration_bounds = array<i64: 1, 1>, scalar_prefetch = 0 : i64, scratch_operands = 0 : i64, tpu.core_type = #tpu.core_type<tc>, window_params = [{transform_indices = @transform_0, window_bounds = array<i64: 2, 256>}, {transform_indices = @transform_1, window_bounds = array<i64: 1, 256>}, {transform_indices = @transform_2, window_bounds = array<i64: 2, 256>}]} {
    %c0 = arith.constant 0 : index
    %c0_0 = arith.constant 0 : index
    %0 = vector.load %arg2[%c0, %c0_0] : memref<2x256xf32, #tpu.memory_space<vmem>>, vector<2x256xf32>
    %c0_1 = arith.constant 0 : index
    %c0_2 = arith.constant 0 : index
    %1 = vector.load %arg3[%c0_1, %c0_2] : memref<1x256xf32, #tpu.memory_space<vmem>>, vector<1x256xf32>
    %2 = vector.broadcast %1 : vector<1x256xf32> to vector<2x256xf32>
    %3 = arith.addf %0, %2 : vector<2x256xf32>
    %c0_3 = arith.constant 0 : index
    %c0_4 = arith.constant 0 : index
    %4 = vector.load %arg4[%c0_3, %c0_4] : memref<2x256xf32, #tpu.memory_space<vmem>>, vector<2x256xf32>
    tpu.vector_store %arg4[%c0_3, %c0_4], %3 {strides = array<i32>} : memref<2x256xf32, #tpu.memory_space<vmem>>, vector<2x256xf32>,
    return
  }
  func.func @transform_0(%arg0: i32, %arg1: i32) -> (i32, i32) {
    %c0_i32 = arith.constant 0 : i32
    return %arg1, %arg0 : i32, i32
  }
  func.func @transform_1(%arg0: i32, %arg1: i32) -> (i32, i32) {
    %c0_i32 = arith.constant 0 : i32
    %c0_i32_0 = arith.constant 0 : i32
    return %c0_i32, %arg0 : i32, i32
  }
  func.func @transform_2(%arg0: i32, %arg1: i32) -> (i32, i32) {
    %c0_i32 = arith.constant 0 : i32
    return %arg1, %arg0 : i32, i32
  }
}

</mosaic_0001>

<bundles_post_ra>
// kernel: tpu_custom_call.1
= control target key start
LH: loop header
LB: loop body
LE: loop exit
PB: predicated region body
PF: predicated region fallthrough
CT: control target
= control target key end

     0   :  { %7 = vsyncpa [#allocation3], 0  ;;  %s157_s0 = inlined_call_operand.hbm [shape: f32[2,256], index: 0, kind: input, shape index: {}]   ;;  %s158_s1 = inlined_call_operand.vmem [shape: f32[1,256], index: 1, kind: input, shape index: {}]   ;;  %s159_s2 = inlined_call_operand.hbm [shape: f32[2,256], index: 2, kind: output, shape index: {}]  }
   0x1   :  { %8 = vsyncpa [#allocation4], 0  ;;  %s112_s9 = smov [#allocation2]   ;;  %s64_s13 = scalar_lea.hbm %s157_s0, 64 }
   0x2   :  { %s15_s10 = sshll.u32 %s112_s9, 4  ;;  %p65_p0 = scmp.ne.s32.totalorder %s157_s0, %s64_s13  ;;  %s16_s10 = int_to_ptr.vmem [resolvable:$true] %s15_s10 }
   0x3   :  { %p68_p1 = scmp.lt.u32.totalorder %s64_s13, %s157_s0 }
   0x5   :  { %p70_p2 = pnand %p68_p1, %p65_p0 }
   0x7   :  { %73 = shalt.err (!%p70_p2)
}
   0x8   :  { %s74_s18 = scalar_lea.vmem %s16_s10, 64  ;;  %p79_p4 = scmp.lt.s32.totalorder %s16_s10, %s16_s10 }
   0x9   :  { %p75_p3 = scmp.ne.s32.totalorder %s16_s10, %s74_s18  ;;  %p80_p5 = scmp.lt.s32.totalorder %s74_s18, %s74_s18 }
   0xb   :  { %p81_p6 = por %p80_p5, %p79_p4 }
   0xd   :  { %p82_p7 = pnand %p81_p6, %p75_p3 }
   0xf   :  { %85 = shalt.err (!%p82_p7)
}
  0x10   :  { %18 = dma.hbm_to_vmem [thread:$0]  %s157_s0, 64, %s16_s10, [#allocation3]  }
  0x11   :  { %108 = dma.done.wait [#allocation3], 64  }
  0x12   :  { %109 = vsyncadd [#allocation3], 4294967232  ;;  %v27_v0 = vlaneseq  ;;  %v113_v1 = vmov 1983009808   ;;  %v25_v7 = vld [vmem:[%s158_s1] sm:$0x3] }
  0x13   :  { %v37_v2 = vunpack.c.l.s4 %v113_v1  ;;  %v24_v12 = vld [vmem:[#allocation2] sm:$0xf]  ;;  %s114_s23 = smov [#allocation5]  }
  0x14   :  { %v28_v3 = vshrl.u32 %v27_v0, 7  ;;  %s52_s0 = sshll.u32 %s114_s23, 4  ;;  %s53_s0 = int_to_ptr.vmem [resolvable:$true] %s52_s0 }
  0x15   :  { %v38_v6 = vunpack.c.0.s8 %v37_v2  ;;  %s86_s24 = scalar_lea.vmem %s53_s0, 64  ;;  %p91_p9 = scmp.lt.s32.totalorder %s53_s0, %s53_s0 }
  0x16   :  { %v29_v4 = vsub.s32 0, %v28_v3  ;;  %v33_v5 = vsub.s32 1, %v28_v3  ;;  %p87_p8 = scmp.ne.s32.totalorder %s53_s0, %s86_s24  ;;  %p92_p10 = scmp.lt.s32.totalorder %s86_s24, %s86_s24 }
  0x17   :  { %v41_v10 = vsub.s32 %v38_v6, %v28_v3 }
  0x18   :  { %v30_v8 = vrot.slane %v25_v7, %v29_v4  ;;  %v34_v9 = vrot.slane %v25_v7, %v33_v5  ;;  %p93_p11 = por %p92_p10, %p91_p9 }
  0x1a   :  { %v35_v11 = vcombine.low %v30_v8, %v34_v9  ;;  %p94_p12 = pnand %p93_p11, %p87_p8 }
  0x1c   :  { %v42_v13 = vrot.slane %v35_v11, %v41_v10 }
  0x1e   :  { %v44_v14 = vadd.f32 %v42_v13, %v24_v12 }
  0x20   :  { %45 = vst [vmem:[#allocation5] sm:$0xf] %v44_v14 }
  0x21   :  { %97 = shalt.err (!%p94_p12)
}
  0x22   :  { %s98_s26 = scalar_lea.hbm %s159_s2, 64 }
  0x23   :  { %p99_p13 = scmp.ne.s32.totalorder %s159_s2, %s98_s26  ;;  %p102_p0 = scmp.lt.u32.totalorder %s98_s26, %s159_s2 }
  0x25   :  { %p104_p1 = pnand %p102_p0, %p99_p13 }
  0x27   :  { %107 = shalt.err (!%p104_p1)
}
  0x28   :  { %55 = dma.vmem_to_hbm [thread:$0]  %s53_s0, 64, %s159_s2, [#allocation4]  }
  0x29   :  { %110 = dma.done.wait [#allocation4], 64  }
  0x2a   :  { %111 = vsyncadd [#allocation4], 4294967232 }
  0x2b   :  { %59 = vsyncpa [#allocation3], 1 }
  0x2c   :  { %60 = vsyncpa [#allocation4], 1 }

</bundles_post_ra>
